<compile_context>
chip_gen: v7x
topology: tpu7x:2x2x1
jax: 0.10.0
libtpu: 0.0.40
codegen_flags: <defaults>
</compile_context>

<pallas_src>
import functools

import jax
import jax.numpy as jnp
from jax.experimental import pallas as pl
from jax.experimental.pallas import tpu as pltpu


def _round_up(v, m):
    return (v + m - 1) // m * m


# --------------------------------------------------------------------------
# graphnorm: pass 1 — per-graph statistics (accumulated over node row-tiles)
# --------------------------------------------------------------------------
def _graphnorm_stats_kernel(seg_ref, x_ref, mscale_ref, ms_ref, inv_ref,
                            s1_ref, s2_ref):
    i = pl.program_id(0)

    @pl.when(i == 0)
    def _():
        s1_ref[...] = jnp.zeros_like(s1_ref)
        s2_ref[...] = jnp.zeros_like(s2_ref)

    seg = seg_ref[...]                       # [B, TM]  rows already scaled by 1/n_g
    x = x_ref[...]                           # [TM, D]
    s1_ref[...] += jnp.dot(seg, x, preferred_element_type=jnp.float32)        # E[x]
    s2_ref[...] += jnp.dot(seg, x * x, preferred_element_type=jnp.float32)    # E[x^2]

    @pl.when(i == pl.num_programs(0) - 1)
    def _():
        mean = s1_ref[...]                                   # [B, D]
        ex2 = s2_ref[...]                                    # [B, D]
        ms = mean * mscale_ref[...]                          # mean * mean_scale
        # E[(x - ms)^2] = E[x^2] - 2*ms*E[x] + ms^2   (single accumulation pass)
        var = jnp.maximum(ex2 - 2.0 * ms * mean + ms * ms, 0.0)
        ms_ref[...] = ms
        inv_ref[...] = jax.lax.rsqrt(var + 1e-6)             # EUP, no divide


# --------------------------------------------------------------------------
# graphnorm: pass 2 — normalize each node row-tile (fully parallel)
# --------------------------------------------------------------------------
def _graphnorm_apply_kernel(x_ref, segt_ref, ms_ref, inv_ref, w_ref, b_ref,
                            o_ref):
    segt = segt_ref[...]                                     # [TM, B] one-hot
    ms_node = jnp.dot(segt, ms_ref[...], preferred_element_type=jnp.float32)
    inv_node = jnp.dot(segt, inv_ref[...], preferred_element_type=jnp.float32)
    sub = x_ref[...] - ms_node
    o_ref[...] = (w_ref[...] * sub * inv_node + b_ref[...]).astype(o_ref.dtype)


def graph_norm(x, batch_num_nodes, weight, bias, mean_scale, *, tile_m=128):
    """Pallas graphnorm.  x: [N, D]; batch_num_nodes: tuple of python ints."""
    assert tile_m % 128 == 0
    n, d = x.shape
    b = len(batch_num_nodes)

    d_pad = _round_up(d, 128)          # lane-dense feature axis
    b_pad = _round_up(b, 8)            # sublane-aligned graph axis
    n_pad = _round_up(n, tile_m)
    grid = (n_pad // tile_m,)

    f32 = jnp.float32
    counts = jnp.asarray(batch_num_nodes, f32)                           # [B]
    batch_index = jnp.repeat(jnp.arange(b, dtype=jnp.int32),
                             jnp.asarray(batch_num_nodes, jnp.int32),
                             total_repeat_length=n)                      # [N]

    onehot = (batch_index[None, :] ==
              jnp.arange(b_pad, dtype=jnp.int32)[:, None]).astype(f32)   # [Bp, N]
    onehot = jnp.pad(onehot, ((0, 0), (0, n_pad - n)))                   # [Bp, Np]
    counts_p = jnp.concatenate([counts, jnp.ones((b_pad - b,), f32)])
    seg_mean = onehot * (1.0 / counts_p)[:, None]                        # rows sum to 1
    seg_t = onehot.T                                                     # [Np, Bp]

    x_p = jnp.pad(x.astype(f32), ((0, n_pad - n), (0, d_pad - d)))
    w_p = jnp.pad(weight.reshape(1, d).astype(f32), ((0, 0), (0, d_pad - d)))
    b_p = jnp.pad(bias.reshape(1, d).astype(f32), ((0, 0), (0, d_pad - d)))
    msc_p = jnp.pad(mean_scale.reshape(1, d).astype(f32),
                    ((0, 0), (0, d_pad - d)))

    # ---- pass 1: per-graph mean*mean_scale and 1/std -------------------
    stats_cost = pl.CostEstimate(
        flops=4 * b_pad * n_pad * d_pad + 8 * b_pad * d_pad,
        transcendentals=b_pad * d_pad,
        bytes_accessed=4 * (n_pad * d_pad + b_pad * n_pad + d_pad
                            + 2 * b_pad * d_pad))
    ms, inv_std = pl.pallas_call(
        _graphnorm_stats_kernel,
        out_shape=(jax.ShapeDtypeStruct((b_pad, d_pad), f32),
                   jax.ShapeDtypeStruct((b_pad, d_pad), f32)),
        grid=grid,
        in_specs=[
            pl.BlockSpec((b_pad, tile_m), lambda i: (0, i)),   # seg_mean row-tile
            pl.BlockSpec((tile_m, d_pad), lambda i: (i, 0)),   # x row-tile
            pl.BlockSpec((1, d_pad), lambda i: (0, 0)),        # mean_scale (resident)
        ],
        out_specs=(pl.BlockSpec((b_pad, d_pad), lambda i: (0, 0)),
                   pl.BlockSpec((b_pad, d_pad), lambda i: (0, 0))),
        scratch_shapes=[pltpu.VMEM((b_pad, d_pad), f32),
                        pltpu.VMEM((b_pad, d_pad), f32)],
        compiler_params=pltpu.CompilerParams(
            dimension_semantics=("arbitrary",)),
        cost_estimate=stats_cost,
    )(seg_mean, x_p, msc_p)

    # ---- pass 2: normalize every node tile ------------------------------
    apply_cost = pl.CostEstimate(
        flops=4 * n_pad * b_pad * d_pad + 4 * n_pad * d_pad,
        transcendentals=0,
        bytes_accessed=4 * (2 * n_pad * d_pad + n_pad * b_pad
                            + 2 * b_pad * d_pad + 2 * d_pad))
    out = pl.pallas_call(
        _graphnorm_apply_kernel,
        out_shape=jax.ShapeDtypeStruct((n_pad, d_pad), x.dtype),
        grid=grid,
        in_specs=[
            pl.BlockSpec((tile_m, d_pad), lambda i: (i, 0)),   # x row-tile
            pl.BlockSpec((tile_m, b_pad), lambda i: (i, 0)),   # segT row-tile
            pl.BlockSpec((b_pad, d_pad), lambda i: (0, 0)),    # ms (resident)
            pl.BlockSpec((b_pad, d_pad), lambda i: (0, 0)),    # inv_std (resident)
            pl.BlockSpec((1, d_pad), lambda i: (0, 0)),        # weight
            pl.BlockSpec((1, d_pad), lambda i: (0, 0)),        # bias
        ],
        out_specs=pl.BlockSpec((tile_m, d_pad), lambda i: (i, 0)),
        compiler_params=pltpu.CompilerParams(
            dimension_semantics=("parallel",)),                 # megacore on v7x
        cost_estimate=apply_cost,
    )(x_p, seg_t, ms, inv_std, w_p, b_p)

    return out[:n, :d]


# --------------------------------------------------------------------------
# layernorm path (nn.LayerNorm(hidden_dim))
# --------------------------------------------------------------------------
def _layernorm_kernel(x_ref, w_ref, b_ref, o_ref, *, eps, d):
    x = x_ref[...].astype(jnp.float32)                       # [TM, Dp]
    col = jax.lax.broadcasted_iota(jnp.int32, x.shape, 1)
    valid = (col < d).astype(jnp.float32)
    inv_d = 1.0 / d
    mean = jnp.sum(x * valid, axis=-1, keepdims=True) * inv_d
    cent = (x - mean) * valid
    var = jnp.sum(cent * cent, axis=-1, keepdims=True) * inv_d
    inv = jax.lax.rsqrt(var + eps)
    o_ref[...] = (cent * inv * w_ref[...] + b_ref[...]).astype(o_ref.dtype)


def layer_norm(x, weight, bias, *, eps=1e-5, tile_m=128):
    n, d = x.shape
    d_pad = _round_up(d, 128)
    n_pad = _round_up(n, tile_m)
    f32 = jnp.float32

    x_p = jnp.pad(x.astype(f32), ((0, n_pad - n), (0, d_pad - d)))
    w_p = jnp.pad(weight.reshape(1, d).astype(f32), ((0, 0), (0, d_pad - d)))
    b_p = jnp.pad(bias.reshape(1, d).astype(f32), ((0, 0), (0, d_pad - d)))

    out = pl.pallas_call(
        functools.partial(_layernorm_kernel, eps=eps, d=d),
        out_shape=jax.ShapeDtypeStruct((n_pad, d_pad), x.dtype),
        grid=(n_pad // tile_m,),
        in_specs=[
            pl.BlockSpec((tile_m, d_pad), lambda i: (i, 0)),
            pl.BlockSpec((1, d_pad), lambda i: (0, 0)),
            pl.BlockSpec((1, d_pad), lambda i: (0, 0)),
        ],
        out_specs=pl.BlockSpec((tile_m, d_pad), lambda i: (i, 0)),
        compiler_params=pltpu.CompilerParams(
            dimension_semantics=("parallel",)),
    )(x_p, w_p, b_p)
    return out[:n, :d]


# --------------------------------------------------------------------------
# NormLayer-style dispatch wrapper
# --------------------------------------------------------------------------
class NormLayerPallas:
    def __init__(self, hidden_dim, norm_type):
        self.hidden_dim = hidden_dim
        self.norm_type = norm_type
        if norm_type in ("layernorm", "graphnorm"):
            self.weight = jnp.ones((hidden_dim,), jnp.float32)
            self.bias = jnp.zeros((hidden_dim,), jnp.float32)
            self.mean_scale = jnp.ones((hidden_dim,), jnp.float32)
        elif norm_type == "batchnorm":
            # TODO(synk): BatchNorm1d running-stats state not implemented in Pallas.
            raise NotImplementedError
        else:
            raise NotImplementedError

    def __call__(self, batch_num_nodes, x):
        if self.norm_type == "layernorm":
            return layer_norm(x, self.weight, self.bias)
        return graph_norm(x, batch_num_nodes, self.weight, self.bias,
                          self.mean_scale)


# --------------------------------------------------------------------------
# Pure-JAX references (for correctness check)
# --------------------------------------------------------------------------
def graph_norm_ref(x, batch_num_nodes, weight, bias, mean_scale):
    n, _ = x.shape
    b = len(batch_num_nodes)
    counts = jnp.asarray(batch_num_nodes, jnp.float32)
    batch_index = jnp.repeat(jnp.arange(b, dtype=jnp.int32),
                             jnp.asarray(batch_num_nodes, jnp.int32),
                             total_repeat_length=n)
    mean = jax.ops.segment_sum(x, batch_index, num_segments=b) / counts[:, None]
    sub = x - mean[batch_index] * mean_scale
    var = jax.ops.segment_sum(sub * sub, batch_index,
                              num_segments=b) / counts[:, None]
    std = jnp.sqrt(var + 1e-6)
    return weight * sub / std[batch_index] + bias


def layer_norm_ref(x, weight, bias, eps=1e-5):
    mean = jnp.mean(x, axis=-1, keepdims=True)
    var = jnp.mean((x - mean) ** 2, axis=-1, keepdims=True)
    return (x - mean) / jnp.sqrt(var + eps) * weight + bias


if __name__ == "__main__":
    key = jax.random.PRNGKey(0)
    k_x, k_w, k_b, k_ms, k_lw, k_lb = jax.random.split(key, 6)

    hidden_dim = 64
    batch_num_nodes = (100, 150, 70, 64)          # 4 graphs, N = 384 nodes
    n = sum(batch_num_nodes)

    x = jax.random.normal(k_x, (n, hidden_dim), jnp.float32)

    # graphnorm with non-trivial parameters
    layer = NormLayerPallas(hidden_dim, "graphnorm")
    layer.weight = 1.0 + 0.1 * jax.random.normal(k_w, (hidden_dim,), jnp.float32)
    layer.bias = 0.1 * jax.random.normal(k_b, (hidden_dim,), jnp.float32)
    layer.mean_scale = 1.0 + 0.1 * jax.random.normal(k_ms, (hidden_dim,),
                                                     jnp.float32)

    out = jax.block_until_ready(layer(batch_num_nodes, x))
    ref = graph_norm_ref(x, batch_num_nodes, layer.weight, layer.bias,
                         layer.mean_scale)
    assert out.shape == x.shape
    assert bool(jnp.all(jnp.isfinite(out)))
    err = float(jnp.max(jnp.abs(out - ref)))
    assert err < 1e-3, f"graphnorm mismatch: {err}"

    # layernorm path
    ln = NormLayerPallas(hidden_dim, "layernorm")
    ln.weight = 1.0 + 0.1 * jax.random.normal(k_lw, (hidden_dim,), jnp.float32)
    ln.bias = 0.1 * jax.random.normal(k_lb, (hidden_dim,), jnp.float32)
    out_ln = jax.block_until_ready(ln(batch_num_nodes, x))
    err_ln = float(jnp.max(jnp.abs(out_ln - layer_norm_ref(x, ln.weight, ln.bias))))
    assert err_ln < 1e-3, f"layernorm mismatch: {err_ln}"

    print("KERNEL_OK")
</pallas_src>

<mosaic_0001>
module attributes {stable_mosaic.version = 11 : i64} {
  func.func @_graphnorm_stats_kernel(%arg0: i32, %arg1: memref<8x128xf32, #tpu.memory_space<vmem>>, %arg2: memref<128x128xf32, #tpu.memory_space<vmem>>, %arg3: memref<1x128xf32, #tpu.memory_space<vmem>>, %arg4: memref<8x128xf32, #tpu.memory_space<vmem>>, %arg5: memref<8x128xf32, #tpu.memory_space<vmem>>, %arg6: memref<8x128xf32, #tpu.memory_space<vmem>>, %arg7: memref<8x128xf32, #tpu.memory_space<vmem>>) attributes {dimension_semantics = [#tpu.dimension_semantics<arbitrary>], iteration_bounds = array<i64: 3>, scalar_prefetch = 0 : i64, scratch_operands = 2 : i64, tpu.core_type = #tpu.core_type<tc>, window_params = [{transform_indices = @transform_0, window_bounds = array<i64: 8, 128>}, {transform_indices = @transform_1, window_bounds = array<i64: 128, 128>}, {pipeline_mode = #tpu.pipeline_mode<synchronous>, transform_indices = @transform_2, window_bounds = array<i64: 1, 128>}, {pipeline_mode = #tpu.pipeline_mode<synchronous>, transform_indices = @transform_3, window_bounds = array<i64: 8, 128>}, {pipeline_mode = #tpu.pipeline_mode<synchronous>, transform_indices = @transform_4, window_bounds = array<i64: 8, 128>}]} {
    %c0_i32 = arith.constant 0 : i32
    %0 = arith.cmpi eq, %arg0, %c0_i32 : i32
    %1 = arith.extui %0 : i1 to i32
    %c0_i32_0 = arith.constant 0 : i32
    %2 = arith.cmpi ne, %1, %c0_i32_0 : i32
    scf.if %2 {
      %cst_14 = arith.constant 0.000000e+00 : f32
      %17 = vector.broadcast %cst_14 : f32 to vector<8x128xf32>
      %c0_15 = arith.constant 0 : index
      %c0_16 = arith.constant 0 : index
      %18 = vector.load %arg6[%c0_15, %c0_16] : memref<8x128xf32, #tpu.memory_space<vmem>>, vector<8x128xf32>
      tpu.vector_store %arg6[%c0_15, %c0_16], %17 {strides = array<i32>} : memref<8x128xf32, #tpu.memory_space<vmem>>, vector<8x128xf32>,
      %cst_17 = arith.constant 0.000000e+00 : f32
      %19 = vector.broadcast %cst_17 : f32 to vector<8x128xf32>
      %c0_18 = arith.constant 0 : index
      %c0_19 = arith.constant 0 : index
      %20 = vector.load %arg7[%c0_18, %c0_19] : memref<8x128xf32, #tpu.memory_space<vmem>>, vector<8x128xf32>
      tpu.vector_store %arg7[%c0_18, %c0_19], %19 {strides = array<i32>} : memref<8x128xf32, #tpu.memory_space<vmem>>, vector<8x128xf32>,
    } else {
    }
    %c0 = arith.constant 0 : index
    %c0_1 = arith.constant 0 : index
    %3 = vector.load %arg1[%c0, %c0_1] : memref<8x128xf32, #tpu.memory_space<vmem>>, vector<8x128xf32>
    %c0_2 = arith.constant 0 : index
    %c0_3 = arith.constant 0 : index
    %4 = vector.load %arg2[%c0_2, %c0_3] : memref<128x128xf32, #tpu.memory_space<vmem>>, vector<128x128xf32>
    %c0_4 = arith.constant 0 : index
    %c0_5 = arith.constant 0 : index
    %5 = vector.load %arg6[%c0_4, %c0_5] : memref<8x128xf32, #tpu.memory_space<vmem>>, vector<8x128xf32>
    %cst = arith.constant dense<0.000000e+00> : vector<8x128xf32>
    %6 = tpu.matmul %3, %4, %cst {dimension_numbers = #tpu.dot_dimension_numbers<[1], [0], [0], [1], [0, 0, 1, 1], [], []>} : vector<8x128xf32>, vector<128x128xf32>, vector<8x128xf32> -> vector<8x128xf32>
    %7 = arith.addf %5, %6 : vector<8x128xf32>
    %c0_6 = arith.constant 0 : index
    %c0_7 = arith.constant 0 : index
    %8 = vector.load %arg6[%c0_6, %c0_7] : memref<8x128xf32, #tpu.memory_space<vmem>>, vector<8x128xf32>
    tpu.vector_store %arg6[%c0_6, %c0_7], %7 {strides = array<i32>} : memref<8x128xf32, #tpu.memory_space<vmem>>, vector<8x128xf32>,
    %c0_8 = arith.constant 0 : index
    %c0_9 = arith.constant 0 : index
    %9 = vector.load %arg7[%c0_8, %c0_9] : memref<8x128xf32, #tpu.memory_space<vmem>>, vector<8x128xf32>
    %10 = arith.mulf %4, %4 : vector<128x128xf32>
    %cst_10 = arith.constant dense<0.000000e+00> : vector<8x128xf32>
    %11 = tpu.matmul %3, %10, %cst_10 {dimension_numbers = #tpu.dot_dimension_numbers<[1], [0], [0], [1], [0, 0, 1, 1], [], []>} : vector<8x128xf32>, vector<128x128xf32>, vector<8x128xf32> -> vector<8x128xf32>
    %12 = arith.addf %9, %11 : vector<8x128xf32>
    %c0_11 = arith.constant 0 : index
    %c0_12 = arith.constant 0 : index
    %13 = vector.load %arg7[%c0_11, %c0_12] : memref<8x128xf32, #tpu.memory_space<vmem>>, vector<8x128xf32>
    tpu.vector_store %arg7[%c0_11, %c0_12], %12 {strides = array<i32>} : memref<8x128xf32, #tpu.memory_space<vmem>>, vector<8x128xf32>,
    %c2_i32 = arith.constant 2 : i32
    %14 = arith.cmpi eq, %arg0, %c2_i32 : i32
    %15 = arith.extui %14 : i1 to i32
    %c0_i32_13 = arith.constant 0 : i32
    %16 = arith.cmpi ne, %15, %c0_i32_13 : i32
    scf.if %16 {
      %c0_14 = arith.constant 0 : index
      %c0_15 = arith.constant 0 : index
      %17 = vector.load %arg6[%c0_14, %c0_15] : memref<8x128xf32, #tpu.memory_space<vmem>>, vector<8x128xf32>
      %c0_16 = arith.constant 0 : index
      %c0_17 = arith.constant 0 : index
      %18 = vector.load %arg7[%c0_16, %c0_17] : memref<8x128xf32, #tpu.memory_space<vmem>>, vector<8x128xf32>
      %c0_18 = arith.constant 0 : index
      %c0_19 = arith.constant 0 : index
      %19 = vector.load %arg3[%c0_18, %c0_19] : memref<1x128xf32, #tpu.memory_space<vmem>>, vector<1x128xf32>
      %20 = vector.broadcast %19 : vector<1x128xf32> to vector<8x128xf32>
      %21 = arith.mulf %17, %20 : vector<8x128xf32>
      %cst_20 = arith.constant 2.000000e+00 : f32
      %22 = vector.broadcast %cst_20 : f32 to vector<8x128xf32>
      %23 = arith.mulf %22, %21 : vector<8x128xf32>
      %24 = arith.mulf %23, %17 : vector<8x128xf32>
      %25 = arith.subf %18, %24 : vector<8x128xf32>
      %26 = arith.mulf %21, %21 : vector<8x128xf32>
      %27 = arith.addf %25, %26 : vector<8x128xf32>
      %cst_21 = arith.constant 0.000000e+00 : f32
      %28 = vector.broadcast %cst_21 : f32 to vector<8x128xf32>
      %29 = arith.maximumf %27, %28 : vector<8x128xf32>
      %c0_22 = arith.constant 0 : index
      %c0_23 = arith.constant 0 : index
      %30 = vector.load %arg4[%c0_22, %c0_23] : memref<8x128xf32, #tpu.memory_space<vmem>>, vector<8x128xf32>
      tpu.vector_store %arg4[%c0_22, %c0_23], %21 {strides = array<i32>} : memref<8x128xf32, #tpu.memory_space<vmem>>, vector<8x128xf32>,
      %cst_24 = arith.constant 9.99999997E-7 : f32
      %31 = vector.broadcast %cst_24 : f32 to vector<8x128xf32>
      %32 = arith.addf %29, %31 : vector<8x128xf32>
      %33 = math.rsqrt %32 : vector<8x128xf32>
      %c0_25 = arith.constant 0 : index
      %c0_26 = arith.constant 0 : index
      %34 = vector.load %arg5[%c0_25, %c0_26] : memref<8x128xf32, #tpu.memory_space<vmem>>, vector<8x128xf32>
      tpu.vector_store %arg5[%c0_25, %c0_26], %33 {strides = array<i32>} : memref<8x128xf32, #tpu.memory_space<vmem>>, vector<8x128xf32>,
    } else {
    }
    return
  }
  func.func @transform_0(%arg0: i32) -> (i32, i32) {
    %c0_i32 = arith.constant 0 : i32
    %c0_i32_0 = arith.constant 0 : i32
    return %c0_i32, %arg0 : i32, i32
  }
  func.func @transform_1(%arg0: i32) -> (i32, i32) {
    %c0_i32 = arith.constant 0 : i32
    %c0_i32_0 = arith.constant 0 : i32
    return %arg0, %c0_i32 : i32, i32
  }
  func.func @transform_2(%arg0: i32) -> (i32, i32) {
    %c0_i32 = arith.constant 0 : i32
    %c0_i32_0 = arith.constant 0 : i32
    %c0_i32_1 = arith.constant 0 : i32
    return %c0_i32, %c0_i32_0 : i32, i32
  }
  func.func @transform_3(%arg0: i32) -> (i32, i32) {
    %c0_i32 = arith.constant 0 : i32
    %c0_i32_0 = arith.constant 0 : i32
    %c0_i32_1 = arith.constant 0 : i32
    return %c0_i32, %c0_i32_0 : i32, i32
  }
  func.func @transform_4(%arg0: i32) -> (i32, i32) {
    %c0_i32 = arith.constant 0 : i32
    %c0_i32_0 = arith.constant 0 : i32
    %c0_i32_1 = arith.constant 0 : i32
    return %c0_i32, %c0_i32_0 : i32, i32
  }
}

</mosaic_0001>

<bundles_post_ra>
// kernel: tpu_custom_call.1
= control target key start
LH: loop header
LB: loop body
LE: loop exit
PB: predicated region body
PF: predicated region fallthrough
CT: control target
= control target key end

     0   :  { %10 = vsyncpa [#allocation5], 0  ;;  %s1226_s0 = inlined_call_operand.hbm [shape: f32[8,384], index: 0, kind: input, shape index: {}]   ;;  %s1227_s1 = inlined_call_operand.hbm [shape: f32[384,128], index: 1, kind: input, shape index: {}]   ;;  %s1228_s2 = inlined_call_operand.vmem [shape: f32[1,128], index: 2, kind: input, shape index: {}]   ;;  %s1229_s3 = inlined_call_operand.hbm [shape: f32[8,128], index: 3, kind: output, shape index: {0}]   ;;  %s1230_s4 = inlined_call_operand.hbm [shape: f32[8,128], index: 4, kind: output, shape index: {1}]  }
   0x1   :  { %12 = vsyncpa [#allocation5 + $0x1], 0 }
   0x2   :  { %13 = vsyncpa [#allocation8], 0 }
   0x3   :  { %15 = vsyncpa [#allocation8 + $0x1], 0 }
   0x4   :  { %16 = vsyncpa [#allocation6], 0 }
   0x5   :  { %17 = vsyncpa [#allocation11], 0  ;;  %s986_s15 = smov 0   ;;  %s988_s16 = smov 0  }
   0x6   :  { %s990_s17 = smov 0   ;;  %s992_s18 = smov 0  }
   0x7 LB: > { %s1005_s19 = sadd.s32 4294967295, %s949_s18   ;;  %s1008_s20 = sadd.s32 1, %s949_s18   ;;  %s949_s18 = sphi %s992_s18, %s1241_s18   ;;  %s945_s17 = sphi %s990_s17, %s1240_s17   ;;  %s941_s16 = sphi %s988_s16, %s1239_s16   ;;  %s937_s15 = sphi %s986_s15, %s1238_s15  }
   0x8   : > { %s27_s21 = ssub.s32 %s949_s18, %s1008_s20  ;;  %s30_s22 = sadd.s32 1, %s945_s17 }
   0x9   : > { %p28_p0 = scmp.eq.s32.totalorder %s27_s21, 0  ;;  %p37_p1 = scmp.ne.s32.totalorder %s945_s17, %s941_s16 }
   0xa   : > { %p38_p2 = scmp.eq.s32.totalorder %s949_s18, 0  ;;  %p43_p3 = scmp.ne.s32.totalorder %s941_s16, %s937_s15 }
   0xb   : > { %s1018_s23 = scalar_select %p28_p0, %s945_s17, %s30_s22  }
   0xc   : > { %p39_p4 = por %p38_p2, %p37_p1  ;;  %p44_p5 = scmp.eq.s32.totalorder %s1005_s19, 0 }
   0xd   : > { %p744_p6 = scmp.lt.s32.totalorder %s949_s18, 3  ;;  %s1027_s25 = sand.u32 1, %s945_s17  }
   0xe   : > { %p1022_p7 = por %p44_p5, %p43_p3  ;;  %s555_s26 = sshll.u32 %s1027_s25, 3 }
   0xf   : > { %s556_s27 = sshll.u32 %s949_s18, 7  ;;  %s163_s5 = scalar_lea.vmem [#allocation4], %s555_s26 }
  0x10   : > { %s1232_s24 = scalar_select %p1022_p7, 1, 0 }
  0x11   : > { %s1034_s30 = scalar_lea.hbm %s1226_s0, %s556_s27  ;;  %s170_s6 = sshll.u32 %s163_s5, 4  ;;  %s1036_s6 = int_to_ptr.vmem [resolvable:$true] %s170_s6 }
  0x12   : > { %p1038_p8 = pnand %p744_p6, %p39_p4  ;;  %s160_s8 = scalar_lea.sflag [#allocation5], %s1027_s25 }
  0x13   : > { %s791_s9 = scalar_lea.hbm %s1034_s30, 128  ;;  %s796_s12 = scalar_lea.hbm %s1226_s0, 384 }
  0x14   : > { %p792_p11 = scmp.ne.s32.totalorder %s1034_s30, %s791_s9  ;;  %p793_p12 = pneg %p1038_p8 }
  0x15   : > { %p797_p1 = scmp.lt.u32.totalorder %s1034_s30, %s1226_s0  ;;  %p798_p2 = scmp.lt.u32.totalorder %s796_s12, %s791_s9 }
  0x16   : > { %p794_p13 = pnand %p793_p12, %p792_p11  ;;  %p800_p4 = scmp.lt.u32.totalorder %s791_s9, %s1034_s30 }
  0x17   : > { %p799_p3 = por %p798_p2, %p797_p1 }
  0x18   : > { %p795_p0 = pneg %p794_p13 }
  0x19   : > { %p801_p5 = por %p800_p4, %p799_p3 }
  0x1b   : > { %p802_p6 = pnand %p801_p5, %p795_p0 }
  0x1d   : > { %805 = shalt.err (!%p802_p6)
}
  0x1e   : > { %s806_s15 = scalar_lea.vmem %s1036_s6, 128  ;;  %s951_s21 = smov [#allocation4]  }
  0x1f   : > { %p807_p11 = scmp.ne.s32.totalorder %s1036_s6, %s806_s15  ;;  %s811_s22 = sshll.u32 %s951_s21, 4  ;;  %s812_s22 = int_to_ptr.vmem [resolvable:$false] %s811_s22 }
  0x20   : > { %s813_s26 = scalar_lea.vmem %s812_s22, 256  ;;  %p814_p10 = scmp.lt.s32.totalorder %s1036_s6, %s812_s22 }
  0x21   : > { %p809_p13 = pnand %p807_p11, %p793_p12  ;;  %p815_p1 = scmp.lt.s32.totalorder %s813_s26, %s806_s15 }
  0x23   : > { %p810_p9 = pneg %p809_p13  ;;  %p816_p2 = por %p815_p1, %p814_p10 }
  0x25   : > { %p817_p3 = pnand %p816_p2, %p810_p9 }
  0x27   : > { %820 = shalt.err (!%p817_p3)
}
  0x28   : > { %740 = dma.hbm_to_vmem [thread:$0]  (!%p1038_p8), %s1034_s30, 128, %s1036_s6, %s160_s8  }
  0x29   : > { %p1234_p0 = scmp.lt.s32.totalorder %s949_s18, 4  ;;  %p1235_p4 = scmp.ge.s32.totalorder %s949_s18, 1 }
  0x2a   : > { %s557_s28 = sshll.u32 %s1027_s25, 7  ;;  %s572_s29 = sshll.u32 %s949_s18, 11 }
  0x2b   : > { %p1074_p5 = pnand %p1235_p4, %p1234_p0  ;;  %s1083_s10 = scalar_lea.hbm %s1227_s1, %s572_s29 }
  0x2c   : > { %s181_s11 = scalar_lea.vmem [#allocation7], %s557_s28  ;;  %s178_s30 = scalar_lea.sflag [#allocation8], %s1027_s25 }
  0x2d   : > { %s188_s12 = sshll.u32 %s181_s11, 4  ;;  %s821_s6 = scalar_lea.hbm %s1083_s10, 2048  ;;  %s1085_s12 = int_to_ptr.vmem [resolvable:$true] %s188_s12 }
  0x2e   : > { %p822_p9 = scmp.ne.s32.totalorder %s1083_s10, %s821_s6  ;;  %s826_s13 = scalar_lea.hbm %s1227_s1, 6144 }
  0x2f   : > { %p827_p11 = scmp.lt.u32.totalorder %s1083_s10, %s1227_s1  ;;  %p828_p13 = scmp.lt.u32.totalorder %s826_s13, %s821_s6 }
  0x30   : > { %p824_p10 = pnand %p822_p9, %p793_p12  ;;  %p830_p2 = scmp.lt.u32.totalorder %s821_s6, %s1083_s10 }
  0x31   : > { %p829_p1 = por %p828_p13, %p827_p11 }
  0x32   : > { %p825_p6 = pneg %p824_p10 }
  0x33   : > { %p831_p3 = por %p830_p2, %p829_p1 }
  0x35   : > { %p832_p0 = pnand %p831_p3, %p825_p6 }
  0x37   : > { %835 = shalt.err (!%p832_p0)
}
  0x38   : > { %s836_s21 = scalar_lea.vmem %s1085_s12, 2048  ;;  %s952_s22 = smov [#allocation7]  }
  0x39   : > { %p837_p4 = scmp.ne.s32.totalorder %s1085_s12, %s836_s21  ;;  %s841_s26 = sshll.u32 %s952_s22, 4  ;;  %s842_s26 = int_to_ptr.vmem [resolvable:$false] %s841_s26 }
  0x3a   : > { %s843_s28 = scalar_lea.vmem %s842_s26, 4096  ;;  %p844_p7 = scmp.lt.s32.totalorder %s1085_s12, %s842_s26 }
  0x3b   : > { %p839_p9 = pnand %p837_p4, %p793_p12  ;;  %p845_p11 = scmp.lt.s32.totalorder %s843_s28, %s836_s21 }
  0x3d   : > { %p840_p10 = pneg %p839_p9  ;;  %p846_p13 = por %p845_p11, %p844_p7 }
  0x3f   : > { %p847_p1 = pnand %p846_p13, %p840_p10 }
  0x41   : > { %850 = shalt.err (!%p847_p1)
}
  0x42   : > { %s953_s29 = smov 128   ;;  %s954_s5 = smov 8  }
  0x43   : > { %743 = dma.hbm_to_vmem [thread:$0]  (!%p1038_p8), %s1083_s10, 2048, %s1085_s12, %s178_s30, %s953_s29, %s953_s29, %s954_s5  }
  0x44   : > { %200 = sbr.rel (%p1074_p5) target bundleno = 418 (0x1a2), region = 32  ;;  %s202_s9 = sand.u32 (!%p1074_p5), 1, %s941_s16  }
  0x45   : > { %s561_s11 = sshll.u32 (!%p1074_p5), %s202_s9, 3  ;;  %s203_s6 = scalar_lea.sflag (!%p1074_p5), [#allocation5], %s202_s9 }
  0x46   : > { %s1116_s18 = scalar_lea.vmem (!%p1074_p5), [#allocation4], %s561_s11  ;;  %p1237_p7 = scmp.ne.s32.totalorder (!%p1074_p5), %s1232_s24, 0 }
  0x4b   : > { %920 = dma.done.wait (%p1237_p7), %s203_s6, 128  }
  0x4c   : > { %922 = vsyncadd (%p1237_p7), %s203_s6, 4294967168  ;;  %s562_s8 = sshll.u32 %s202_s9, 7  ;;  %s212_s7 = scalar_lea.sflag [#allocation8], %s202_s9 }
  0x4d   : > { %s1122_s25 = scalar_lea.vmem [#allocation7], %s562_s8 }
  0x4e   : > { %924 = dma.done.wait (%p1237_p7), %s212_s7, 2048  }
  0x4f   : > { %926 = vsyncadd (%p1237_p7), %s212_s7, 4294965248  ;;  %p563_p8 = scmp.ne.s32.totalorder %s1005_s19, 0 }
  0x50   : > { %v955_v0 = vmov (!%p563_p8), 0.0  }
  0x51   : > { %244 = sbr.rel (%p563_p8) target bundleno = 88 (0x58), region = 44  ;;  %245 = vst [vmem:[#allocation2] sm:$0xff] (!%p563_p8), %v955_v0  ;;  %246 = vst [vmem:[#allocation3] sm:$0xff] (!%p563_p8), %v955_v0 }
  0x58 PF: > { %v248_v1 = vld [vmem:[%s1122_s25] sm:$0xff]  ;;  %v249_v2 = vld [vmem:[%s1122_s25 + $0x8] sm:$0xff]  ;;  %v250_v3 = vld [vmem:[%s1122_s25 + $0x10] sm:$0xff]  ;;  %v956_v4 = vmov 0.0|0.0   ;;  %vm957_vm0 = vmmov 0   ;;  %v958_v13 = vmov 0.0  }
  0x59   : > { %677 = vmatprep.subr.bf16.mxu0 %v956_v4  ;;  %v678_v5 = vpack.c.bf16 %v249_v2, %v248_v1  ;;  %701 = vmatprep.subr.bf16.mxu1 %v956_v4  ;;  %v338_v6 = vmul.f32 %v248_v1, %v248_v1  ;;  %v339_v7 = vmul.f32 %v249_v2, %v249_v2  ;;  %v251_v8 = vld [vmem:[%s1122_s25 + $0x18] sm:$0xff]  ;;  %v252_v11 = vld [vmem:[%s1122_s25 + $0x20] sm:$0xff]  ;;  %v253_v12 = vld [vmem:[%s1122_s25 + $0x28] sm:$0xff]  ;;  %p564_p12 = scmp.ne.s32.totalorder %s1005_s19, 2 }
  0x5a   : > { %v340_v9 = vmul.f32 %v250_v3, %v250_v3  ;;  %v341_v10 = vmul.f32 %v251_v8, %v251_v8  ;;  %639 = vmatprep.mubr.msk.f32.mxu0 %vm957_vm0, %v958_v13  ;;  %v681_v15 = vpack.c.bf16 %v251_v8, %v250_v3  ;;  %v342_v17 = vmul.f32 %v252_v11, %v252_v11  ;;  %v254_v19 = vld [vmem:[%s1122_s25 + $0x30] sm:$0xff]  ;;  %v255_v20 = vld [vmem:[%s1122_s25 + $0x38] sm:$0xff]  ;;  %v256_v25 = vld [vmem:[%s1122_s25 + $0x40] sm:$0xff] }
  0x5b   : > { %679 = vmatpush3.bf16.msra.mxu0 %v678_v5  ;;  %v702_v14 = vpack.c.bf16 %v339_v7, %v338_v6  ;;  %v343_v18 = vmul.f32 %v253_v12, %v253_v12  ;;  %v684_v21 = vpack.c.bf16 %v253_v12, %v252_v11  ;;  %674 = vmatprep.mubr.msk.f32.mxu1 %vm957_vm0, %v958_v13  ;;  %v257_v26 = vld [vmem:[%s1122_s25 + $0x48] sm:$0xff]  ;;  %v258_v31 = vld [vmem:[%s1122_s25 + $0x50] sm:$0xff]  ;;  %v259_v32 = vld [vmem:[%s1122_s25 + $0x58] sm:$0xff] }
  0x5c   : > { %680 = vmatprep.subr.bf16.mxu0 %v956_v4  ;;  %v705_v16 = vpack.c.bf16 %v341_v10, %v340_v9  ;;  %v344_v23 = vmul.f32 %v254_v19, %v254_v19  ;;  %v345_v24 = vmul.f32 %v255_v20, %v255_v20  ;;  %v687_v27 = vpack.c.bf16 %v255_v20, %v254_v19  ;;  %v260_v37 = vld [vmem:[%s1122_s25 + $0x60] sm:$0xff]  ;;  %v261_v38 = vld [vmem:[%s1122_s25 + $0x68] sm:$0xff]  ;;  %v262_v43 = vld [vmem:[%s1122_s25 + $0x70] sm:$0xff] }
  0x5d   : > { %703 = vmatpush3.bf16.msra.mxu1 %v702_v14  ;;  %v708_v22 = vpack.c.bf16 %v343_v18, %v342_v17  ;;  %v346_v29 = vmul.f32 %v256_v25, %v256_v25  ;;  %v347_v30 = vmul.f32 %v257_v26, %v257_v26  ;;  %v690_v33 = vpack.c.bf16 %v257_v26, %v256_v25  ;;  %v263_v44 = vld [vmem:[%s1122_s25 + $0x78] sm:$0xff]  ;;  %v264_v52 = vld [vmem:[#allocation2] sm:$0xff]  ;;  %v337_v54 = vld [vmem:[#allocation3] sm:$0xff] }
  0x5e   : > { %704 = vmatprep.subr.bf16.mxu1 %v956_v4  ;;  %v711_v28 = vpack.c.bf16 %v345_v24, %v344_v23  ;;  %v348_v35 = vmul.f32 %v258_v31, %v258_v31  ;;  %v349_v36 = vmul.f32 %v259_v32, %v259_v32  ;;  %v693_v39 = vpack.c.bf16 %v259_v32, %v258_v31  ;;  %v247_v51 = vld [vmem:[%s1116_s18] sm:$0xff]  ;;  %v565_v61 = vld [vmem:[%s1228_s2] ss:$0 sm:$0xff] (!%p564_p12) }
  0x5f   : > { %682 = vmatpush3.bf16.msra.mxu0 %v681_v15  ;;  %v714_v34 = vpack.c.bf16 %v347_v30, %v346_v29  ;;  %v350_v41 = vmul.f32 %v260_v37, %v260_v37  ;;  %v351_v42 = vmul.f32 %v261_v38, %v261_v38  ;;  %v696_v45 = vpack.c.bf16 %v261_v38, %v260_v37 }
  0x60   : > { %683 = vmatprep.subr.bf16.mxu0 %v956_v4  ;;  %v717_v40 = vpack.c.bf16 %v349_v36, %v348_v35  ;;  %v352_v47 = vmul.f32 %v262_v43, %v262_v43  ;;  %v353_v48 = vmul.f32 %v263_v44, %v263_v44  ;;  %v699_v49 = vpack.c.bf16 %v263_v44, %v262_v43 }
  0x61   : > { %706 = vmatpush3.bf16.msra.mxu1 %v705_v16  ;;  %v720_v46 = vpack.c.bf16 %v351_v42, %v350_v41 }
  0x62   : > { %707 = vmatprep.subr.bf16.mxu1 %v956_v4  ;;  %v723_v50 = vpack.c.bf16 %v353_v48, %v352_v47 }
  0x63   : > { %685 = vmatpush3.bf16.msra.mxu0 %v684_v21 }
  0x64   : > { %686 = vmatprep.subr.bf16.mxu0 %v956_v4 }
  0x65   : > { %709 = vmatpush3.bf16.msra.mxu1 %v708_v22 }
  0x66   : > { %710 = vmatprep.subr.bf16.mxu1 %v956_v4 }
  0x67   : > { %688 = vmatpush3.bf16.msra.mxu0 %v687_v27 }
  0x68   : > { %689 = vmatprep.subr.bf16.mxu0 %v956_v4 }
  0x69   : > { %712 = vmatpush3.bf16.msra.mxu1 %v711_v28 }
  0x6a   : > { %713 = vmatprep.subr.bf16.mxu1 %v956_v4 }
  0x6b   : > { %691 = vmatpush3.bf16.msra.mxu0 %v690_v33 }
  0x6c   : > { %692 = vmatprep.subr.bf16.mxu0 %v956_v4 }
  0x6d   : > { %715 = vmatpush3.bf16.msra.mxu1 %v714_v34 }
  0x6e   : > { %716 = vmatprep.subr.bf16.mxu1 %v956_v4 }
  0x6f   : > { %694 = vmatpush3.bf16.msra.mxu0 %v693_v39 }
  0x70   : > { %695 = vmatprep.subr.bf16.mxu0 %v956_v4 }
  0x71   : > { %718 = vmatpush3.bf16.msra.mxu1 %v717_v40 }
  0x72   : > { %719 = vmatprep.subr.bf16.mxu1 %v956_v4 }
  0x73   : > { %697 = vmatpush3.bf16.msra.mxu0 %v696_v45 }
  0x74   : > { %698 = vmatprep.subr.bf16.mxu0 %v956_v4 }
  0x75   : > { %721 = vmatpush3.bf16.msra.mxu1 %v720_v46 }
  0x76   : > { %722 = vmatprep.subr.bf16.mxu1 %v956_v4 }
  0x77   : > { %700 = vmatpush3.bf16.msra.mxu0 %v699_v49 }
  0x79   : > { %724 = vmatpush3.bf16.msra.mxu1 %v723_v50 }
  0x7a   : > { %640 = vmatmul.mubr.f32.vlgmr.msra.gmra.mrb[0].mxu0 %v247_v51 }
  0x7c   : > { %675 = vmatmul.mubr.f32.vlgmr.msra.gmra.mrb[0].mxu1 %v247_v51 }
 0x14c   : > { %429 = sbr.rel (%p564_p12) target bundleno = 370 (0x172), region = 48 }
 0x14d   : > { %v331_v53 = vpop.f32.mrb[0].mxu0 }
 0x14e   : > { %v335_v55 = vadd.f32 %v331_v53, %v264_v52  ;;  %v641_v56 = vpop.f32.mrb[1].mxu0 }
 0x14f   : > { %v420_v57 = vpop.f32.mrb[0].mxu1 }
 0x150   : > { %336 = vst [vmem:[#allocation2] sm:$0xff] %v335_v55  ;;  %v424_v58 = vadd.f32 %v420_v57, %v337_v54  ;;  %v676_v59 = vpop.f32.mrb[1].mxu1 }
 0x152   : > { %425 = vst [vmem:[#allocation3] sm:$0xff] %v424_v58 }
 0x157   : > { %v430_v60 = vld [vmem:[#allocation2] sm:$0xff] }
 0x158   : > { %v439_v62 = vmul.f32 %v565_v61, %v430_v60 }
 0x159   : > { %v431_v0 = vld [vmem:[#allocation3] sm:$0xff] }
 0x15a   : > { %v440_v63 = vmul.f32 2.0, %v439_v62  ;;  %446 = vst [vmem:[#allocation9] sm:$0xff] %v439_v62  ;;  %v443_v2 = vmul.f32 %v439_v62, %v439_v62 }
 0x15c   : > { %v441_v1 = vmul.f32 %v440_v63, %v430_v60 }
 0x15e   : > { %v442_v3 = vsub.f32 %v431_v0, %v441_v1 }
 0x160   : > { %v444_v4 = vadd.f32 %v443_v2, %v442_v3 }
 0x162   : > { %v445_v5 = vmax.f32 %v444_v4, 0.0 }
 0x164   : > { %v447_v6 = vadd.f32 1e-06, %v445_v5 }
 0x166   : > { %789 = vrsqrt.f32 %v447_v6 }
 0x170   : > { %v790_v7 = vpop.eup %789 }
 0x171   : > { %449 = vst [vmem:[#allocation10] sm:$0xff] %v790_v7 }
 0x172 PF: > { %p745_p5 = scmp.eq.s32.totalorder %s1005_s19, 2  ;;  %s959_s10 = smov [#allocation9]  }
 0x173   : > { %s457_s12 = sshll.u32 %s959_s10, 4  ;;  %s960_s30 = smov [#allocation10]   ;;  %s458_s12 = int_to_ptr.vmem [resolvable:$true] %s457_s12 }
 0x174   : > { %s468_s13 = sshll.u32 %s960_s30, 4  ;;  %s851_s14 = scalar_lea.vmem %s458_s12, 128  ;;  %s469_s13 = int_to_ptr.vmem [resolvable:$true] %s468_s13 }
 0x175   : > { %p852_p6 = scmp.ne.s32.totalorder %s458_s12, %s851_s14  ;;  %p858_p0 = scmp.lt.s32.totalorder %s458_s12, %s458_s12 }
 0x176   : > { %p859_p4 = scmp.lt.s32.totalorder %s851_s14, %s851_s14 }
 0x177   : > { %p853_p2 = pnand %p852_p6, %p745_p5 }
 0x178   : > { %p860_p9 = por %p859_p4, %p858_p0 }
 0x179   : > { %p854_p3 = pneg %p853_p2 }
 0x17b   : > { %p861_p10 = pnand %p860_p9, %p854_p3 }
 0x17d   : > { %864 = shalt.err (!%p861_p10)
}
 0x17e   : > { %s865_s22 = scalar_lea.hbm %s1229_s3, 128 }
 0x17f   : > { %p866_p11 = scmp.ne.s32.totalorder %s1229_s3, %s865_s22  ;;  %p871_p7 = scmp.lt.u32.totalorder %s865_s22, %s1229_s3 }
 0x181   : > { %p867_p13 = pnand %p866_p11, %p745_p5 }
 0x183   : > { %p868_p1 = pneg %p867_p13 }
 0x185   : > { %p873_p8 = pnand %p871_p7, %p868_p1 }
 0x187   : > { %876 = shalt.err (!%p873_p8)
}
 0x188   : > { %730 = dma.vmem_to_hbm [thread:$0]  (%p745_p5), %s458_s12, 128, %s1229_s3, [#allocation6]  }
 0x189   : > { %s877_s6 = scalar_lea.vmem %s469_s13, 128  ;;  %p884_p3 = scmp.lt.s32.totalorder %s469_s13, %s469_s13 }
 0x18a   : > { %p878_p12 = scmp.ne.s32.totalorder %s469_s13, %s877_s6  ;;  %p885_p0 = scmp.lt.s32.totalorder %s877_s6, %s877_s6 }
 0x18c   : > { %p879_p6 = pnand %p878_p12, %p745_p5  ;;  %p886_p4 = por %p885_p0, %p884_p3 }
 0x18e   : > { %p880_p2 = pneg %p879_p6 }
 0x190   : > { %p887_p9 = pnand %p886_p4, %p880_p2 }
 0x192   : > { %890 = shalt.err (!%p887_p9)
}
 0x193   : > { %s891_s7 = scalar_lea.hbm %s1230_s4, 128 }
 0x194   : > { %p892_p10 = scmp.ne.s32.totalorder %s1230_s4, %s891_s7  ;;  %p897_p1 = scmp.lt.u32.totalorder %s891_s7, %s1230_s4 }
 0x196   : > { %p893_p11 = pnand %p892_p10, %p745_p5 }
 0x198   : > { %p894_p13 = pneg %p893_p11 }
 0x19a   : > { %p899_p7 = pnand %p897_p1, %p894_p13 }
 0x19c   : > { %902 = shalt.err (!%p899_p7)
}
 0x19d   : > { %732 = dma.vmem_to_hbm [thread:$0]  (%p745_p5), %s469_s13, 128, %s1230_s4, [#allocation11]  }
 0x19e   : > { %928 = dma.done.wait (%p745_p5), [#allocation6], 128  }
 0x19f   : > { %930 = vsyncadd (%p745_p5), [#allocation6], 4294967168 }
 0x1a0   : > { %932 = dma.done.wait (%p745_p5), [#allocation11], 128  }
 0x1a1   : > { %934 = vsyncadd (%p745_p5), [#allocation11], 4294967168 }
 0x1a2 PF: > { %p20_p8 = scmp.ge.s32.totalorder %s1008_s20, 5   ;;  %s1238_s15 = smov %s941_s16 }
 0x1a3   : > { %s1239_s16 = smov %s945_s17  ;;  %s1240_s17 = smov %s1018_s23 }
 0x1a4   : > { %s1241_s18 = smov %s1008_s20  ;;  %22 = sbr.rel (!%p20_p8) target bundleno = 7 (0x7), region = 98 }
 0x1ab   :  { %485 = vsyncpa [#allocation5], 1 }
 0x1ac   :  { %487 = vsyncpa [#allocation5 + $0x1], 1 }
 0x1ad   :  { %488 = vsyncpa [#allocation8], 1 }
 0x1ae   :  { %490 = vsyncpa [#allocation8 + $0x1], 1 }
 0x1af   :  { %491 = vsyncpa [#allocation6], 1 }
 0x1b0   :  { %493 = vsyncpa [#allocation6 + $0x1], 1 }
 0x1b1   :  { %494 = vsyncpa [#allocation11], 1 }

</bundles_post_ra>
